<compile_context>
chip_gen: v7x
topology: tpu7x:2x2x1
jax: 0.10.0
libtpu: 0.0.40
codegen_flags: <defaults>
</compile_context>

<pallas_src>
import functools

import jax
import jax.numpy as jnp
from jax import lax
from jax.experimental import pallas as pl
from jax.experimental.pallas import tpu as pltpu


def convnet_kernel(p_ref, wc_ref, cb_ref, w2_ref, fb_ref, o_ref):
    """One batch tile of TB samples.

    p_ref : (1, 9*TB, 576) f32  im2col patches; row = q*TB + b, col = k*64 + p
    wc_ref: (576, 192)     f32  structured conv weight Wc[(k,p),(c,p')]
    cb_ref: (1, 192)       f32  conv bias broadcast over pooled pixels
    w2_ref: (192, 10)      f32  fc weight (fc_w.T)
    fb_ref: (1, 10)        f32  fc bias
    o_ref : (TB, 10)       f32  log-probabilities
    """
    tb = o_ref.shape[0]

    # Conv responses for all 9 pool-window positions of all TB samples in one
    # MXU matmul:  c_all[q*TB + b, c*64 + p] = sum_k patch[b,q,k,p] * cw[c,k].
    c_all = jnp.dot(p_ref[0], wc_ref[...], preferred_element_type=jnp.float32)

    # 3x3 / stride-3 max pool == running max over the 9 window positions q.
    pooled = c_all[0:tb]
    for q in range(1, 9):
        pooled = jnp.maximum(pooled, c_all[q * tb:(q + 1) * tb])

    # Per-channel bias after the max is equivalent (bias is constant over the
    # pool window, max is monotone); then ReLU.  pooled: (TB, 192), (c,h,w).
    pooled = jnp.maximum(pooled + cb_ref[...], 0.0)

    # Fully connected layer: one (TB, 192) @ (192, 10) matmul + bias.
    y = jnp.dot(pooled, w2_ref[...], preferred_element_type=jnp.float32)
    y = y + fb_ref[...]

    # log_softmax along the class axis.
    m = jnp.max(y, axis=1, keepdims=True)
    lse = m + jnp.log(jnp.sum(jnp.exp(y - m), axis=1, keepdims=True))
    o_ref[...] = y - lse


def _round_up(n, m):
    return (n + m - 1) // m * m


def _build_pool_patches(x):
    """x: (B,1,28,28) f32 -> (B, 9, 576) with P[b, q, k*64 + ph*8 + pw].

    q = qi*3+qj is the position inside the 3x3/stride-3 pool window, k = ki*3+kj
    the conv tap, (ph,pw) the pooled pixel:
        P[b, q, k*64+p] = x[b, 0, ph*3 + qi + ki, pw*3 + qj + kj].
    """
    B = x.shape[0]
    pt = lax.conv_general_dilated_patches(
        x, filter_shape=(3, 3), window_strides=(1, 1), padding="VALID")
    # pt[b, ki*3+kj, i, j] = x[b, 0, i+ki, j+kj]; shape (B, 9, 26, 26).
    pt = pt[:, :, :24, :24].reshape(B, 9, 8, 3, 8, 3)   # b, k, ph, qi, pw, qj
    return pt.transpose(0, 3, 5, 1, 2, 4).reshape(B, 9, 9 * 64)


@functools.partial(jax.jit, static_argnames=("block_b",))
def convnet_forward(x, conv_w, conv_b, fc_w, fc_b, block_b=128):
    """x: (B, 1, 28, 28) NCHW float32 -> (B, 10) log-probs."""
    B = x.shape[0]
    TB = min(_round_up(block_b, 8), _round_up(B, 8))   # batch tile (x8 sublanes)
    Bp = _round_up(B, TB)
    nblk = Bp // TB

    patches = _build_pool_patches(x.astype(jnp.float32))          # (B, 9, 576)
    if Bp != B:
        patches = jnp.pad(patches, ((0, Bp - B), (0, 0), (0, 0)))
    # Lane-dense per-block layout: row inside a block = q*TB + b_local.
    patches = (patches.reshape(nblk, TB, 9, 576)
               .transpose(0, 2, 1, 3)
               .reshape(nblk, 9 * TB, 576))

    # Structured im2col conv weight: Wc[k*64+p, c*64+p'] = conv_w[c,k]*(p==p').
    cw = conv_w.reshape(3, 9).astype(jnp.float32)                 # [c, k]
    eye64 = jnp.eye(64, dtype=jnp.float32)
    wc = (cw.T[:, None, :, None] * eye64[None, :, None, :]).reshape(576, 192)
    cb = jnp.repeat(conv_b.astype(jnp.float32), 64).reshape(1, 192)
    w2 = fc_w.astype(jnp.float32).T                               # (192, 10)
    fb = fc_b.astype(jnp.float32).reshape(1, 10)

    out = pl.pallas_call(
        convnet_kernel,
        out_shape=jax.ShapeDtypeStruct((Bp, 10), jnp.float32),
        grid_spec=pltpu.PrefetchScalarGridSpec(
            num_scalar_prefetch=0,
            grid=(nblk,),
            in_specs=[
                pl.BlockSpec((1, 9 * TB, 576), lambda b: (b, 0, 0)),
                pl.BlockSpec((576, 192), lambda b: (0, 0)),
                pl.BlockSpec((1, 192), lambda b: (0, 0)),
                pl.BlockSpec((192, 10), lambda b: (0, 0)),
                pl.BlockSpec((1, 10), lambda b: (0, 0)),
            ],
            out_specs=pl.BlockSpec((TB, 10), lambda b: (b, 0)),
        ),
        compiler_params=pltpu.CompilerParams(
            dimension_semantics=("parallel",)),
    )(patches, wc, cb, w2, fb)
    return out[:B]


def convnet_reference(x, conv_w, conv_b, fc_w, fc_b):
    """Pure-JAX reference matching PyTorch semantics."""
    out = lax.conv_general_dilated(
        x, conv_w, window_strides=(1, 1), padding="VALID",
        dimension_numbers=("NCHW", "OIHW", "NCHW"))
    out = out + conv_b[None, :, None, None]
    out = lax.reduce_window(out, -jnp.inf, lax.max,
                            (1, 1, 3, 3), (1, 1, 3, 3), "VALID")
    out = jnp.maximum(out, 0.0)
    feat = out.reshape(out.shape[0], -1)          # (B, 192) in (c, h, w) order
    y = feat @ fc_w.T + fc_b
    return jax.nn.log_softmax(y, axis=1)


if __name__ == "__main__":
    # Deterministic parameter init (PyTorch-style uniform(-1/sqrt(fan_in), ..)).
    root = jax.random.PRNGKey(0)
    kx, k1, k2, k3, k4 = jax.random.split(root, 5)
    conv_bound = 1.0 / 3.0            # fan_in = 1*3*3 = 9
    fc_bound = 1.0 / (192.0 ** 0.5)
    conv_w = jax.random.uniform(k1, (3, 1, 3, 3), jnp.float32, -conv_bound, conv_bound)
    conv_b = jax.random.uniform(k2, (3,), jnp.float32, -conv_bound, conv_bound)
    fc_w = jax.random.uniform(k3, (10, 192), jnp.float32, -fc_bound, fc_bound)
    fc_b = jax.random.uniform(k4, (10,), jnp.float32, -fc_bound, fc_bound)

    # Small MNIST-sized batch; block_b=8 exercises a multi-step (parallel) grid.
    x = jax.random.normal(kx, (16, 1, 28, 28), jnp.float32)

    out = convnet_forward(x, conv_w, conv_b, fc_w, fc_b, block_b=8)
    out = jax.block_until_ready(out)

    ref = convnet_reference(x, conv_w, conv_b, fc_w, fc_b)
    assert out.shape == (16, 10)
    assert jnp.allclose(out, ref, atol=1e-4, rtol=1e-3), (out, ref)

    print("KERNEL_OK")
</pallas_src>

<mosaic_0001>
module attributes {stable_mosaic.version = 11 : i64} {
  func.func @convnet_kernel(%arg0: i32, %arg1: memref<1x72x576xf32, #tpu.memory_space<vmem>>, %arg2: memref<576x192xf32, #tpu.memory_space<vmem>>, %arg3: memref<1x192xf32, #tpu.memory_space<vmem>>, %arg4: memref<192x10xf32, #tpu.memory_space<vmem>>, %arg5: memref<1x10xf32, #tpu.memory_space<vmem>>, %arg6: memref<8x10xf32, #tpu.memory_space<vmem>>) attributes {dimension_semantics = [#tpu.dimension_semantics<parallel>], iteration_bounds = array<i64: 2>, scalar_prefetch = 0 : i64, scratch_operands = 0 : i64, tpu.core_type = #tpu.core_type<tc>, window_params = [{transform_indices = @transform_0, window_bounds = array<i64: 1, 72, 576>}, {pipeline_mode = #tpu.pipeline_mode<synchronous>, transform_indices = @transform_1, window_bounds = array<i64: 576, 192>}, {pipeline_mode = #tpu.pipeline_mode<synchronous>, transform_indices = @transform_2, window_bounds = array<i64: 1, 192>}, {pipeline_mode = #tpu.pipeline_mode<synchronous>, transform_indices = @transform_3, window_bounds = array<i64: 192, 10>}, {pipeline_mode = #tpu.pipeline_mode<synchronous>, transform_indices = @transform_4, window_bounds = array<i64: 1, 10>}, {transform_indices = @transform_5, window_bounds = array<i64: 8, 10>}]} {
    %c0 = arith.constant 0 : index
    %c0_0 = arith.constant 0 : index
    %c0_1 = arith.constant 0 : index
    %0 = vector.load %arg1[%c0, %c0_0, %c0_1] : memref<1x72x576xf32, #tpu.memory_space<vmem>>, vector<1x72x576xf32>
    %1 = vector.shape_cast %0 : vector<1x72x576xf32> to vector<72x576xf32>
    %c0_2 = arith.constant 0 : index
    %c0_3 = arith.constant 0 : index
    %2 = vector.load %arg2[%c0_2, %c0_3] : memref<576x192xf32, #tpu.memory_space<vmem>>, vector<576x192xf32>
    %cst = arith.constant dense<0.000000e+00> : vector<72x192xf32>
    %3 = tpu.matmul %1, %2, %cst {dimension_numbers = #tpu.dot_dimension_numbers<[1], [0], [0], [1], [0, 0, 1, 1], [], []>} : vector<72x576xf32>, vector<576x192xf32>, vector<72x192xf32> -> vector<72x192xf32>
    %4 = vector.extract_strided_slice %3 {offsets = [0, 0], sizes = [8, 192], strides = [1, 1]} : vector<72x192xf32> to vector<8x192xf32>
    %5 = vector.extract_strided_slice %3 {offsets = [8, 0], sizes = [8, 192], strides = [1, 1]} : vector<72x192xf32> to vector<8x192xf32>
    %6 = arith.maximumf %4, %5 : vector<8x192xf32>
    %7 = vector.extract_strided_slice %3 {offsets = [16, 0], sizes = [8, 192], strides = [1, 1]} : vector<72x192xf32> to vector<8x192xf32>
    %8 = arith.maximumf %6, %7 : vector<8x192xf32>
    %9 = vector.extract_strided_slice %3 {offsets = [24, 0], sizes = [8, 192], strides = [1, 1]} : vector<72x192xf32> to vector<8x192xf32>
    %10 = arith.maximumf %8, %9 : vector<8x192xf32>
    %11 = vector.extract_strided_slice %3 {offsets = [32, 0], sizes = [8, 192], strides = [1, 1]} : vector<72x192xf32> to vector<8x192xf32>
    %12 = arith.maximumf %10, %11 : vector<8x192xf32>
    %13 = vector.extract_strided_slice %3 {offsets = [40, 0], sizes = [8, 192], strides = [1, 1]} : vector<72x192xf32> to vector<8x192xf32>
    %14 = arith.maximumf %12, %13 : vector<8x192xf32>
    %15 = vector.extract_strided_slice %3 {offsets = [48, 0], sizes = [8, 192], strides = [1, 1]} : vector<72x192xf32> to vector<8x192xf32>
    %16 = arith.maximumf %14, %15 : vector<8x192xf32>
    %17 = vector.extract_strided_slice %3 {offsets = [56, 0], sizes = [8, 192], strides = [1, 1]} : vector<72x192xf32> to vector<8x192xf32>
    %18 = arith.maximumf %16, %17 : vector<8x192xf32>
    %19 = vector.extract_strided_slice %3 {offsets = [64, 0], sizes = [8, 192], strides = [1, 1]} : vector<72x192xf32> to vector<8x192xf32>
    %20 = arith.maximumf %18, %19 : vector<8x192xf32>
    %c0_4 = arith.constant 0 : index
    %c0_5 = arith.constant 0 : index
    %21 = vector.load %arg3[%c0_4, %c0_5] : memref<1x192xf32, #tpu.memory_space<vmem>>, vector<1x192xf32>
    %22 = vector.broadcast %21 : vector<1x192xf32> to vector<8x192xf32>
    %23 = arith.addf %20, %22 : vector<8x192xf32>
    %cst_6 = arith.constant 0.000000e+00 : f32
    %24 = vector.broadcast %cst_6 : f32 to vector<8x192xf32>
    %25 = arith.maximumf %23, %24 : vector<8x192xf32>
    %c0_7 = arith.constant 0 : index
    %c0_8 = arith.constant 0 : index
    %26 = vector.load %arg4[%c0_7, %c0_8] : memref<192x10xf32, #tpu.memory_space<vmem>>, vector<192x10xf32>
    %cst_9 = arith.constant dense<0.000000e+00> : vector<8x10xf32>
    %27 = tpu.matmul %25, %26, %cst_9 {dimension_numbers = #tpu.dot_dimension_numbers<[1], [0], [0], [1], [0, 0, 1, 1], [], []>} : vector<8x192xf32>, vector<192x10xf32>, vector<8x10xf32> -> vector<8x10xf32>
    %c0_10 = arith.constant 0 : index
    %c0_11 = arith.constant 0 : index
    %28 = vector.load %arg5[%c0_10, %c0_11] : memref<1x10xf32, #tpu.memory_space<vmem>>, vector<1x10xf32>
    %29 = vector.broadcast %28 : vector<1x10xf32> to vector<8x10xf32>
    %30 = arith.addf %27, %29 : vector<8x10xf32>
    %cst_12 = arith.constant dense<0xFF800000> : vector<8xf32>
    %31 = vector.multi_reduction <maximumf>, %30, %cst_12 [1] : vector<8x10xf32> to vector<8xf32>
    %32 = vector.shape_cast %31 : vector<8xf32> to vector<8x1xf32>
    %33 = vector.broadcast %32 : vector<8x1xf32> to vector<8x10xf32>
    %34 = arith.subf %30, %33 : vector<8x10xf32>
    %35 = math.exp %34 : vector<8x10xf32>
    %cst_13 = arith.constant dense<0.000000e+00> : vector<8xf32>
    %36 = vector.multi_reduction <add>, %35, %cst_13 [1] : vector<8x10xf32> to vector<8xf32>
    %37 = vector.shape_cast %36 : vector<8xf32> to vector<8x1xf32>
    %38 = math.log %37 : vector<8x1xf32>
    %39 = arith.addf %32, %38 : vector<8x1xf32>
    %40 = vector.broadcast %39 : vector<8x1xf32> to vector<8x10xf32>
    %41 = arith.subf %30, %40 : vector<8x10xf32>
    %c0_14 = arith.constant 0 : index
    %c0_15 = arith.constant 0 : index
    %42 = vector.load %arg6[%c0_14, %c0_15] : memref<8x10xf32, #tpu.memory_space<vmem>>, vector<8x10xf32>
    tpu.vector_store %arg6[%c0_14, %c0_15], %41 {strides = array<i32>} : memref<8x10xf32, #tpu.memory_space<vmem>>, vector<8x10xf32>,
    return
  }
  func.func @transform_0(%arg0: i32) -> (i32, i32, i32) {
    %c0_i32 = arith.constant 0 : i32
    %c0_i32_0 = arith.constant 0 : i32
    %c0_i32_1 = arith.constant 0 : i32
    return %arg0, %c0_i32, %c0_i32_0 : i32, i32, i32
  }
  func.func @transform_1(%arg0: i32) -> (i32, i32) {
    %c0_i32 = arith.constant 0 : i32
    %c0_i32_0 = arith.constant 0 : i32
    %c0_i32_1 = arith.constant 0 : i32
    return %c0_i32, %c0_i32_0 : i32, i32
  }
  func.func @transform_2(%arg0: i32) -> (i32, i32) {
    %c0_i32 = arith.constant 0 : i32
    %c0_i32_0 = arith.constant 0 : i32
    %c0_i32_1 = arith.constant 0 : i32
    return %c0_i32, %c0_i32_0 : i32, i32
  }
  func.func @transform_3(%arg0: i32) -> (i32, i32) {
    %c0_i32 = arith.constant 0 : i32
    %c0_i32_0 = arith.constant 0 : i32
    %c0_i32_1 = arith.constant 0 : i32
    return %c0_i32, %c0_i32_0 : i32, i32
  }
  func.func @transform_4(%arg0: i32) -> (i32, i32) {
    %c0_i32 = arith.constant 0 : i32
    %c0_i32_0 = arith.constant 0 : i32
    %c0_i32_1 = arith.constant 0 : i32
    return %c0_i32, %c0_i32_0 : i32, i32
  }
  func.func @transform_5(%arg0: i32) -> (i32, i32) {
    %c0_i32 = arith.constant 0 : i32
    %c0_i32_0 = arith.constant 0 : i32
    return %arg0, %c0_i32 : i32, i32
  }
}

</mosaic_0001>

<bundles_post_ra>
// kernel: convnet_forward.1
= control target key start
LH: loop header
LB: loop body
LE: loop exit
PB: predicated region body
PF: predicated region fallthrough
CT: control target
= control target key end

     0   :  { %10 = vsyncpa [#allocation3], 0  ;;  %s2088_s0 = inlined_call_operand.vmem [shape: f32[2,72,576], index: 0, kind: input, shape index: {}]   ;;  %s2089_s1 = inlined_call_operand.vmem [shape: f32[576,192], index: 1, kind: input, shape index: {}]   ;;  %s2090_s2 = inlined_call_operand.vmem [shape: f32[1,192], index: 2, kind: input, shape index: {}]   ;;  %s2091_s3 = inlined_call_operand.vmem [shape: f32[192,10], index: 3, kind: input, shape index: {}]   ;;  %s2092_s4 = inlined_call_operand.vmem [shape: f32[1,10], index: 4, kind: input, shape index: {}]   ;;  %s2093_s5 = inlined_call_operand.hbm [shape: f32[16,10], index: 5, kind: output, shape index: {}]  }
   0x1   :  { %12 = vsyncpa [#allocation3 + $0x1], 0  ;;  %s1401_s18 = smov 0   ;;  %s1403_s19 = smov 0  }
   0x2   :  { %s1405_s20 = smov 0   ;;  %s1407_s21 = smov 0  }
   0x3 LB: > { %s1422_s22 = sadd.s32 4294967295, %s1366_s21   ;;  %s1021_s23 = sadd.s32 4294967294, %s1366_s21   ;;  %s1366_s21 = sphi %s1407_s21, %s2099_s21   ;;  %s1362_s20 = sphi %s1405_s20, %s2098_s20   ;;  %s1358_s19 = sphi %s1403_s19, %s2097_s19   ;;  %s1354_s18 = sphi %s1401_s18, %s2096_s18  }
   0x4   : > { %s1426_s24 = sadd.s32 1, %s1366_s21   ;;  %s135_s25 = sadd.s32 1, %s1362_s20 }
   0x5   : > { %s132_s26 = ssub.s32 %s1366_s21, %s1426_s24  ;;  %p145_p0 = scmp.ne.s32.totalorder %s1362_s20, %s1358_s19 }
   0x6   : > { %p133_p1 = scmp.eq.s32.totalorder %s132_s26, 0  ;;  %p146_p2 = scmp.eq.s32.totalorder %s1422_s22, 1 }
   0x7   : > { %p151_p3 = scmp.ne.s32.totalorder %s1358_s19, %s1354_s18  ;;  %p152_p4 = scmp.eq.s32.totalorder %s1021_s23, 1 }
   0x8   : > { %s1437_s27 = scalar_select %p133_p1, %s1362_s20, %s135_s25  }
   0x9   : > { %p1439_p5 = por %p146_p2, %p145_p0  ;;  %p1443_p6 = por %p152_p4, %p151_p3 }
   0xa   : > { %p1024_p7 = scmp.ge.s32.totalorder %s1366_s21, 1  ;;  %p190_p8 = scmp.lt.s32.totalorder %s1366_s21, 3 }
   0xc   : > { %p191_p9 = pnand %p1024_p7, %p190_p8 }
   0xd   : > { %v333_v0 = vld [vmem:[%s2089_s1 + $0x208] sm:$0xff] (!%p191_p9)  ;;  %v335_v1 = vld [vmem:[%s2089_s1 + $0x218] sm:$0xff] (!%p191_p9)  ;;  %v332_v2 = vld [vmem:[%s2089_s1 + $0x200] sm:$0xff] (!%p191_p9)  ;;  %p218_p10 = scmp.lt.s32.totalorder (!%p191_p9), %s1422_s22, 1  ;;  %vm412_vm0 = vcmask (!%p191_p9), 523264   ;;  %vm933_vm1 = vcmask (!%p191_p9), 80896  }
   0xe   : > { %194 = sbr.rel (%p191_p9) target bundleno = 916 (0x394), region = 40  ;;  %v1106_v3 = vpack.c.bf16 (!%p191_p9), %v335_v1, %v333_v0  ;;  %v334_v4 = vld [vmem:[%s2089_s1 + $0x210] sm:$0xff] (!%p191_p9)  ;;  %v337_v5 = vld [vmem:[%s2089_s1 + $0x228] sm:$0xff] (!%p191_p9)  ;;  %v339_v6 = vld [vmem:[%s2089_s1 + $0x238] sm:$0xff] (!%p191_p9)  ;;  %s215_s12 = sand.u32 (!%p191_p9), 1, %s1358_s19  }
   0xf   : > { %v1108_v7 = vpack.c.bf16 (!%p191_p9), %v334_v4, %v332_v2  ;;  %v1110_v8 = vpack.c.bf16 (!%p191_p9), %v339_v6, %v337_v5  ;;  %v336_v9 = vld [vmem:[%s2089_s1 + $0x220] sm:$0xff] (!%p191_p9)  ;;  %v338_v10 = vld [vmem:[%s2089_s1 + $0x230] sm:$0xff] (!%p191_p9)  ;;  %v341_v11 = vld [vmem:[%s2089_s1 + $0x248] sm:$0xff] (!%p191_p9)  ;;  %s1025_s13 = sshll.u32 (!%p191_p9), %s215_s12, 3  ;;  %s949_s23 = scalar_lea.sflag (!%p191_p9), [#allocation3], %s215_s12 }
  0x10   : > { %1107 = vmatprep.subr.bf16.mxu0 (!%p191_p9), %v1106_v3  ;;  %v343_v12 = vld [vmem:[%s2089_s1 + $0x258] sm:$0xff] (!%p191_p9)  ;;  %v1112_v13 = vpack.c.bf16 (!%p191_p9), %v338_v10, %v336_v9  ;;  %v340_v15 = vld [vmem:[%s2089_s1 + $0x240] sm:$0xff] (!%p191_p9)  ;;  %v342_v16 = vld [vmem:[%s2089_s1 + $0x250] sm:$0xff] (!%p191_p9)  ;;  %s217_s14 = scalar_lea.vmem (!%p191_p9), [#allocation2], %s1025_s13 }
  0x11   : > { %1109 = vmatpush1.bf16.msra.mxu0 (!%p191_p9), %v1108_v7  ;;  %v1114_v14 = vpack.c.bf16 (!%p191_p9), %v343_v12, %v341_v11  ;;  %v345_v17 = vld [vmem:[%s2089_s1 + $0x268] sm:$0xff] (!%p191_p9)  ;;  %v347_v18 = vld [vmem:[%s2089_s1 + $0x278] sm:$0xff] (!%p191_p9)  ;;  %v1116_v19 = vpack.c.bf16 (!%p191_p9), %v342_v16, %v340_v15  ;;  %v344_v21 = vld [vmem:[%s2089_s1 + $0x260] sm:$0xff] (!%p191_p9)  ;;  %s962_s15 = sshll.u32 (!%p191_p9), %s217_s14, 4  ;;  %s2047_s15 = int_to_ptr.vmem [resolvable:$true] %s962_s15 }
  0x12   : > { %1111 = vmatprep.subr.bf16.mxu0 (!%p191_p9), %v1110_v8  ;;  %v1118_v20 = vpack.c.bf16 (!%p191_p9), %v347_v18, %v345_v17  ;;  %v346_v22 = vld [vmem:[%s2089_s1 + $0x270] sm:$0xff] (!%p191_p9)  ;;  %v349_v23 = vld [vmem:[%s2089_s1 + $0x288] sm:$0xff] (!%p191_p9)  ;;  %v351_v24 = vld [vmem:[%s2089_s1 + $0x298] sm:$0xff] (!%p191_p9)  ;;  %s1304_s25 = scalar_lea.vmem (!%p191_p9), %s2047_s15, 128 }
  0x13   : > { %v1120_v25 = vpack.c.bf16 (!%p191_p9), %v346_v22, %v344_v21  ;;  %v348_v26 = vld [vmem:[%s2089_s1 + $0x280] sm:$0xff] (!%p191_p9)  ;;  %v269_v27 = vld [vmem:[%s2089_s1 + $0x8] sm:$0xff] (!%p191_p9)  ;;  %v271_v28 = vld [vmem:[%s2089_s1 + $0x18] sm:$0xff] (!%p191_p9)  ;;  %v1122_v29 = vpack.c.bf16 (!%p191_p9), %v351_v24, %v349_v23  ;;  %p1305_p11 = scmp.ne.s32.totalorder (!%p191_p9), %s2047_s15, %s1304_s25 }
  0x14   : > { %v350_v30 = vld [vmem:[%s2089_s1 + $0x290] sm:$0xff] (!%p191_p9)  ;;  %v1042_v31 = vpack.c.bf16 (!%p191_p9), %v271_v28, %v269_v27  ;;  %v268_v32 = vld [vmem:[%s2089_s1] sm:$0xff] (!%p191_p9)  ;;  %v353_v34 = vld [vmem:[%s2089_s1 + $0x2a8] sm:$0xff] (!%p191_p9) }
  0x15   : > { %1113 = vmatpush1.bf16.msra.mxu0 %v1112_v13  ;;  %v270_v33 = vld [vmem:[%s2089_s1 + $0x10] sm:$0xff]  ;;  %v355_v35 = vld [vmem:[%s2089_s1 + $0x2b8] sm:$0xff]  ;;  %v273_v37 = vld [vmem:[%s2089_s1 + $0x28] sm:$0xff]  ;;  %v1124_v39 = vpack.c.bf16 %v350_v30, %v348_v26  ;;  %s1567_s17 = scalar_select %p218_p10, %s1422_s22, 1 }
  0x16   : > { %1115 = vmatprep.subr.bf16.mxu0 %v1114_v14  ;;  %v1044_v36 = vpack.c.bf16 %v270_v33, %v268_v32  ;;  %1043 = vmatprep.subr.bf16.mxu1 %v1042_v31  ;;  %v275_v38 = vld [vmem:[%s2089_s1 + $0x38] sm:$0xff]  ;;  %v352_v40 = vld [vmem:[%s2089_s1 + $0x2a0] sm:$0xff]  ;;  %v274_v43 = vld [vmem:[%s2089_s1 + $0x30] sm:$0xff]  ;;  %v1126_v44 = vpack.c.bf16 %v355_v35, %v353_v34  ;;  %p1306_p12 = pnand %p1305_p11, %p1439_p5 }
  0x17   : > { %v1046_v41 = vpack.c.bf16 %v275_v38, %v273_v37  ;;  %v272_v42 = vld [vmem:[%s2089_s1 + $0x20] sm:$0xff]  ;;  %v354_v45 = vld [vmem:[%s2089_s1 + $0x2b0] sm:$0xff]  ;;  %v277_v47 = vld [vmem:[%s2089_s1 + $0x48] sm:$0xff]  ;;  %s1258_s7 = smul.u32 360, %s1567_s17  ;;  %s1039_s17 = sshll.u32 %s1422_s22, 7 }
  0x18   : > { %1045 = vmatpush1.bf16.msra.mxu1 %v1044_v36  ;;  %v1048_v46 = vpack.c.bf16 %v274_v43, %v272_v42  ;;  %v279_v48 = vld [vmem:[%s2089_s1 + $0x58] sm:$0xff]  ;;  %v357_v49 = vld [vmem:[%s2089_s1 + $0x2c8] sm:$0xff]  ;;  %v276_v52 = vld [vmem:[%s2089_s1 + $0x40] sm:$0xff]  ;;  %v1128_v54 = vpack.c.bf16 %v354_v45, %v352_v40  ;;  %p1307_p13 = pneg %p1306_p12  ;;  %s1370_s22 = smov [#allocation2]  }
  0x19   : > { %1117 = vmatpush1.bf16.msra.mxu0 %v1116_v19  ;;  %v359_v50 = vld [vmem:[%s2089_s1 + $0x2d8] sm:$0xff]  ;;  %1047 = vmatprep.subr.bf16.mxu1 %v1046_v41  ;;  %v1050_v51 = vpack.c.bf16 %v279_v48, %v277_v47  ;;  %v278_v53 = vld [vmem:[%s2089_s1 + $0x50] sm:$0xff]  ;;  %v356_v55 = vld [vmem:[%s2089_s1 + $0x2c0] sm:$0xff]  ;;  %s1627_s11 = scalar_lea.vmem %s2088_s0, %s1258_s7  ;;  %s1308_s26 = sshll.u32 %s1370_s22, 4  ;;  %s1309_s26 = int_to_ptr.vmem [resolvable:$false] %s1308_s26 }
  0x1a   : > { %1119 = vmatprep.subr.bf16.mxu0 %v1118_v20  ;;  %v1052_v56 = vpack.c.bf16 %v278_v53, %v276_v52  ;;  %v281_v57 = vld [vmem:[%s2089_s1 + $0x68] sm:$0xff]  ;;  %v283_v58 = vld [vmem:[%s2089_s1 + $0x78] sm:$0xff]  ;;  %v1130_v59 = vpack.c.bf16 %v359_v50, %v357_v49  ;;  %v358_v60 = vld [vmem:[%s2089_s1 + $0x2d0] sm:$0xff]  ;;  %s1310_s30 = scalar_lea.vmem %s1309_s26, 256  ;;  %p1311_p0 = scmp.lt.s32.totalorder %s2047_s15, %s1309_s26 }
  0x1b   : > { %v1054_v61 = vpack.c.bf16 %v283_v58, %v281_v57  ;;  %v280_v62 = vld [vmem:[%s2089_s1 + $0x60] sm:$0xff]  ;;  %v282_v63 = vld [vmem:[%s2089_s1 + $0x70] sm:$0xff]  ;;  %v361_v0 = vld [vmem:[%s2089_s1 + $0x2e8] sm:$0xff]  ;;  %v1132_v4 = vpack.c.bf16 %v358_v60, %v356_v55  ;;  %p1312_p1 = scmp.lt.s32.totalorder %s1310_s30, %s1304_s25 }
  0x1c   : > { %1049 = vmatpush1.bf16.msra.mxu1 %v1048_v46  ;;  %v363_v1 = vld [vmem:[%s2089_s1 + $0x2f8] sm:$0xff]  ;;  %v285_v2 = vld [vmem:[%s2089_s1 + $0x88] sm:$0xff]  ;;  %v360_v5 = vld [vmem:[%s2089_s1 + $0x2e0] sm:$0xff]  ;;  %v1056_v7 = vpack.c.bf16 %v282_v63, %v280_v62 }
  0x1d   : > { %1121 = vmatpush1.bf16.msra.mxu0 %v1120_v25  ;;  %1051 = vmatprep.subr.bf16.mxu1 %v1050_v51  ;;  %v287_v3 = vld [vmem:[%s2089_s1 + $0x98] sm:$0xff]  ;;  %v362_v6 = vld [vmem:[%s2089_s1 + $0x2f0] sm:$0xff]  ;;  %v1134_v8 = vpack.c.bf16 %v363_v1, %v361_v0  ;;  %v365_v9 = vld [vmem:[%s2089_s1 + $0x308] sm:$0xff]  ;;  %p1313_p2 = por %p1312_p1, %p1311_p0 }
  0x1e   : > { %1123 = vmatprep.subr.bf16.mxu0 %v1122_v29  ;;  %v1058_v10 = vpack.c.bf16 %v287_v3, %v285_v2  ;;  %v284_v11 = vld [vmem:[%s2089_s1 + $0x80] sm:$0xff]  ;;  %v286_v12 = vld [vmem:[%s2089_s1 + $0x90] sm:$0xff]  ;;  %v367_v13 = vld [vmem:[%s2089_s1 + $0x318] sm:$0xff]  ;;  %v1136_v16 = vpack.c.bf16 %v362_v6, %v360_v5 }
  0x1f   : > { %v289_v14 = vld [vmem:[%s2089_s1 + $0xa8] sm:$0xff]  ;;  %v291_v15 = vld [vmem:[%s2089_s1 + $0xb8] sm:$0xff]  ;;  %v364_v17 = vld [vmem:[%s2089_s1 + $0x300] sm:$0xff]  ;;  %v1060_v20 = vpack.c.bf16 %v286_v12, %v284_v11  ;;  %v1138_v21 = vpack.c.bf16 %v367_v13, %v365_v9  ;;  %p1314_p3 = pnand %p1313_p2, %p1307_p13 }
  0x20   : > { %1053 = vmatpush1.bf16.msra.mxu1 %v1052_v56  ;;  %v366_v18 = vld [vmem:[%s2089_s1 + $0x310] sm:$0xff]  ;;  %v369_v19 = vld [vmem:[%s2089_s1 + $0x328] sm:$0xff]  ;;  %v371_v22 = vld [vmem:[%s2089_s1 + $0x338] sm:$0xff]  ;;  %v1062_v23 = vpack.c.bf16 %v291_v15, %v289_v14 }
  0x21   : > { %1125 = vmatpush1.bf16.msra.mxu0 %v1124_v39  ;;  %1055 = vmatprep.subr.bf16.mxu1 %v1054_v61  ;;  %v288_v24 = vld [vmem:[%s2089_s1 + $0xa0] sm:$0xff]  ;;  %v290_v25 = vld [vmem:[%s2089_s1 + $0xb0] sm:$0xff]  ;;  %v293_v26 = vld [vmem:[%s2089_s1 + $0xc8] sm:$0xff]  ;;  %v1140_v29 = vpack.c.bf16 %v366_v18, %v364_v17  ;;  %v1142_v33 = vpack.c.bf16 %v371_v22, %v369_v19 }
  0x22   : > { %1127 = vmatprep.subr.bf16.mxu0 %v1126_v44  ;;  %v295_v27 = vld [vmem:[%s2089_s1 + $0xd8] sm:$0xff]  ;;  %v368_v30 = vld [vmem:[%s2089_s1 + $0x320] sm:$0xff]  ;;  %v370_v31 = vld [vmem:[%s2089_s1 + $0x330] sm:$0xff]  ;;  %v1064_v32 = vpack.c.bf16 %v290_v25, %v288_v24 }
  0x23   : > { %v226_v28 = vld [vmem:[%s1627_s11 + $0x18] sm:$0xff]  ;;  %v373_v34 = vld [vmem:[%s2089_s1 + $0x348] sm:$0xff]  ;;  %v1066_v35 = vpack.c.bf16 %v295_v27, %v293_v26  ;;  %v292_v36 = vld [vmem:[%s2089_s1 + $0xc0] sm:$0xff]  ;;  %v1144_v41 = vpack.c.bf16 %v370_v31, %v368_v30 }
  0x24   : > { %1057 = vmatpush1.bf16.msra.mxu1 %v1056_v7  ;;  %623 = vmatprep.mubr.f32.mxu0 %v226_v28  ;;  %v294_v37 = vld [vmem:[%s2089_s1 + $0xd0] sm:$0xff]  ;;  %v375_v38 = vld [vmem:[%s2089_s1 + $0x358] sm:$0xff]  ;;  %v297_v39 = vld [vmem:[%s2089_s1 + $0xe8] sm:$0xff] }
  0x25   : > { %1129 = vmatpush1.bf16.msra.mxu0 %v1128_v54  ;;  %1059 = vmatprep.subr.bf16.mxu1 %v1058_v10  ;;  %v299_v40 = vld [vmem:[%s2089_s1 + $0xf8] sm:$0xff]  ;;  %v372_v42 = vld [vmem:[%s2089_s1 + $0x340] sm:$0xff]  ;;  %v374_v43 = vld [vmem:[%s2089_s1 + $0x350] sm:$0xff]  ;;  %v1068_v44 = vpack.c.bf16 %v294_v37, %v292_v36  ;;  %v1146_v45 = vpack.c.bf16 %v375_v38, %v373_v34 }
  0x26   : > { %1131 = vmatprep.subr.bf16.mxu0 %v1130_v59  ;;  %v377_v46 = vld [vmem:[%s2089_s1 + $0x368] sm:$0xff]  ;;  %v1070_v47 = vpack.c.bf16 %v299_v40, %v297_v39  ;;  %v296_v48 = vld [vmem:[%s2089_s1 + $0xe0] sm:$0xff]  ;;  %v298_v49 = vld [vmem:[%s2089_s1 + $0xf0] sm:$0xff]  ;;  %v1148_v53 = vpack.c.bf16 %v374_v43, %v372_v42 }
  0x27   : > { %v379_v50 = vld [vmem:[%s2089_s1 + $0x378] sm:$0xff]  ;;  %v301_v51 = vld [vmem:[%s2089_s1 + $0x108] sm:$0xff]  ;;  %v376_v54 = vld [vmem:[%s2089_s1 + $0x360] sm:$0xff]  ;;  %v1072_v56 = vpack.c.bf16 %v298_v49, %v296_v48 }
  0x28   : > { %1061 = vmatpush1.bf16.msra.mxu1 %v1060_v20  ;;  %v303_v52 = vld [vmem:[%s2089_s1 + $0x118] sm:$0xff]  ;;  %v378_v55 = vld [vmem:[%s2089_s1 + $0x370] sm:$0xff]  ;;  %v1150_v57 = vpack.c.bf16 %v379_v50, %v377_v46  ;;  %v381_v58 = vld [vmem:[%s2089_s1 + $0x388] sm:$0xff] }
  0x29   : > { %1133 = vmatpush1.bf16.msra.mxu0 %v1132_v4  ;;  %1063 = vmatprep.subr.bf16.mxu1 %v1062_v23  ;;  %v1074_v59 = vpack.c.bf16 %v303_v52, %v301_v51  ;;  %v300_v60 = vld [vmem:[%s2089_s1 + $0x100] sm:$0xff]  ;;  %v302_v61 = vld [vmem:[%s2089_s1 + $0x110] sm:$0xff]  ;;  %v383_v62 = vld [vmem:[%s2089_s1 + $0x398] sm:$0xff]  ;;  %v1152_v1 = vpack.c.bf16 %v378_v55, %v376_v54 }
  0x2a   : > { %1135 = vmatprep.subr.bf16.mxu0 %v1134_v8  ;;  %v305_v63 = vld [vmem:[%s2089_s1 + $0x128] sm:$0xff]  ;;  %v307_v0 = vld [vmem:[%s2089_s1 + $0x138] sm:$0xff]  ;;  %v380_v2 = vld [vmem:[%s2089_s1 + $0x380] sm:$0xff]  ;;  %v1076_v4 = vpack.c.bf16 %v302_v61, %v300_v60  ;;  %v1154_v5 = vpack.c.bf16 %v383_v62, %v381_v58 }
  0x2b   : > { %v382_v3 = vld [vmem:[%s2089_s1 + $0x390] sm:$0xff]  ;;  %v385_v6 = vld [vmem:[%s2089_s1 + $0x3a8] sm:$0xff]  ;;  %v1078_v7 = vpack.c.bf16 %v307_v0, %v305_v63  ;;  %v304_v8 = vld [vmem:[%s2089_s1 + $0x120] sm:$0xff] }
  0x2c   : > { %1065 = vmatpush1.bf16.msra.mxu1 %v1064_v32  ;;  %v306_v9 = vld [vmem:[%s2089_s1 + $0x130] sm:$0xff]  ;;  %v387_v10 = vld [vmem:[%s2089_s1 + $0x3b8] sm:$0xff]  ;;  %v309_v11 = vld [vmem:[%s2089_s1 + $0x148] sm:$0xff]  ;;  %v1156_v13 = vpack.c.bf16 %v382_v3, %v380_v2 }
  0x2d   : > { %1137 = vmatpush1.bf16.msra.mxu0 %v1136_v16  ;;  %1067 = vmatprep.subr.bf16.mxu1 %v1066_v35  ;;  %v311_v12 = vld [vmem:[%s2089_s1 + $0x158] sm:$0xff]  ;;  %v384_v14 = vld [vmem:[%s2089_s1 + $0x3a0] sm:$0xff]  ;;  %v386_v15 = vld [vmem:[%s2089_s1 + $0x3b0] sm:$0xff]  ;;  %v1080_v16 = vpack.c.bf16 %v306_v9, %v304_v8  ;;  %v1158_v17 = vpack.c.bf16 %v387_v10, %v385_v6 }
  0x2e   : > { %1139 = vmatprep.subr.bf16.mxu0 %v1138_v21  ;;  %v389_v18 = vld [vmem:[%s2089_s1 + $0x3c8] sm:$0xff]  ;;  %v1082_v19 = vpack.c.bf16 %v311_v12, %v309_v11  ;;  %v308_v20 = vld [vmem:[%s2089_s1 + $0x140] sm:$0xff]  ;;  %v310_v21 = vld [vmem:[%s2089_s1 + $0x150] sm:$0xff]  ;;  %v1160_v25 = vpack.c.bf16 %v386_v15, %v384_v14 }
  0x2f   : > { %v391_v22 = vld [vmem:[%s2089_s1 + $0x3d8] sm:$0xff]  ;;  %v313_v23 = vld [vmem:[%s2089_s1 + $0x168] sm:$0xff]  ;;  %v388_v26 = vld [vmem:[%s2089_s1 + $0x3c0] sm:$0xff] }
  0x30   : > { %1069 = vmatpush1.bf16.msra.mxu1 %v1068_v44  ;;  %v315_v24 = vld [vmem:[%s2089_s1 + $0x178] sm:$0xff]  ;;  %v390_v27 = vld [vmem:[%s2089_s1 + $0x3d0] sm:$0xff]  ;;  %v393_v28 = vld [vmem:[%s2089_s1 + $0x3e8] sm:$0xff]  ;;  %v1162_v30 = vpack.c.bf16 %v391_v22, %v389_v18 }
  0x31   : > { %1141 = vmatpush1.bf16.msra.mxu0 %v1140_v29  ;;  %1071 = vmatprep.subr.bf16.mxu1 %v1070_v47  ;;  %v1084_v29 = vpack.c.bf16 %v310_v21, %v308_v20  ;;  %v395_v31 = vld [vmem:[%s2089_s1 + $0x3f8] sm:$0xff]  ;;  %v1086_v32 = vpack.c.bf16 %v315_v24, %v313_v23  ;;  %v314_v34 = vld [vmem:[%s2089_s1 + $0x170] sm:$0xff]  ;;  %v317_v35 = vld [vmem:[%s2089_s1 + $0x188] sm:$0xff]  ;;  %v1164_v38 = vpack.c.bf16 %v390_v27, %v388_v26 }
  0x32   : > { %1143 = vmatprep.subr.bf16.mxu0 %v1142_v33  ;;  %v312_v33 = vld [vmem:[%s2089_s1 + $0x160] sm:$0xff]  ;;  %v319_v36 = vld [vmem:[%s2089_s1 + $0x198] sm:$0xff]  ;;  %v224_v37 = vld [vmem:[%s1627_s11 + $0x8] sm:$0xff]  ;;  %v1166_v42 = vpack.c.bf16 %v395_v31, %v393_v28 }
  0x33   : > { %504 = vmatprep.mubr.f32.mxu1 %v224_v37  ;;  %v392_v39 = vld [vmem:[%s2089_s1 + $0x3e0] sm:$0xff]  ;;  %v394_v40 = vld [vmem:[%s2089_s1 + $0x3f0] sm:$0xff]  ;;  %v397_v43 = vld [vmem:[%s2089_s1 + $0x408] sm:$0xff]  ;;  %v1090_v44 = vpack.c.bf16 %v319_v36, %v317_v35  ;;  %v1368_v37 = vmov 0.0|0.0  }
  0x34   : > { %1073 = vmatpush1.bf16.msra.mxu1 %v1072_v56  ;;  %v318_v46 = vld [vmem:[%s2089_s1 + $0x190] sm:$0xff]  ;;  %v399_v47 = vld [vmem:[%s2089_s1 + $0x418] sm:$0xff]  ;;  %v321_v48 = vld [vmem:[%s2089_s1 + $0x1a8] sm:$0xff]  ;;  %v1168_v50 = vpack.c.bf16 %v394_v40, %v392_v39 }
  0x35   : > { %1145 = vmatpush1.bf16.msra.mxu0 %v1144_v41  ;;  %1075 = vmatprep.subr.bf16.mxu1 %v1074_v59  ;;  %v1088_v41 = vpack.c.bf16 %v314_v34, %v312_v33  ;;  %v323_v49 = vld [vmem:[%s2089_s1 + $0x1b8] sm:$0xff]  ;;  %v1170_v52 = vpack.c.bf16 %v399_v47, %v397_v43  ;;  %v398_v54 = vld [vmem:[%s2089_s1 + $0x410] sm:$0xff]  ;;  %v401_v55 = vld [vmem:[%s2089_s1 + $0x428] sm:$0xff] }
  0x36   : > { %1147 = vmatprep.subr.bf16.mxu0 %v1146_v45  ;;  %v316_v45 = vld [vmem:[%s2089_s1 + $0x180] sm:$0xff]  ;;  %v1094_v56 = vpack.c.bf16 %v323_v49, %v321_v48  ;;  %v322_v59 = vld [vmem:[%s2089_s1 + $0x1b0] sm:$0xff]  ;;  %v325_v60 = vld [vmem:[%s2089_s1 + $0x1c8] sm:$0xff] }
  0x37   : > { %v1092_v51 = vpack.c.bf16 %v318_v46, %v316_v45  ;;  %v320_v58 = vld [vmem:[%s2089_s1 + $0x1a0] sm:$0xff]  ;;  %v327_v61 = vld [vmem:[%s2089_s1 + $0x1d8] sm:$0xff]  ;;  %v225_v62 = vld [vmem:[%s1627_s11 + $0x10] sm:$0xff] }
  0x38   : > { %1077 = vmatpush1.bf16.msra.mxu1 %v1076_v4  ;;  %v231_v0 = vld [vmem:[%s1627_s11 + $0x40] sm:$0xff]  ;;  %v402_v3 = vld [vmem:[%s2089_s1 + $0x430] sm:$0xff]  ;;  %v405_v4 = vld [vmem:[%s2089_s1 + $0x448] sm:$0xff] }
  0x39   : > { %1149 = vmatpush1.bf16.msra.mxu0 %v1148_v53  ;;  %1079 = vmatprep.subr.bf16.mxu1 %v1078_v7  ;;  %v396_v53 = vld [vmem:[%s2089_s1 + $0x400] sm:$0xff]  ;;  %v407_v6 = vld [vmem:[%s2089_s1 + $0x458] sm:$0xff]  ;;  %v1098_v7 = vpack.c.bf16 %v327_v61, %v325_v60  ;;  %v326_v9 = vld [vmem:[%s2089_s1 + $0x1d0] sm:$0xff] }
  0x3a   : > { %1151 = vmatprep.subr.bf16.mxu0 %v1150_v57  ;;  %v403_v57 = vld [vmem:[%s2089_s1 + $0x438] sm:$0xff]  ;;  %v1172_v63 = vpack.c.bf16 %v398_v54, %v396_v53  ;;  %v400_v2 = vld [vmem:[%s2089_s1 + $0x420] sm:$0xff]  ;;  %v329_v10 = vld [vmem:[%s2089_s1 + $0x1e8] sm:$0xff]  ;;  %v1178_v15 = vpack.c.bf16 %v407_v6, %v405_v4 }
  0x3b   : > { %v324_v8 = vld [vmem:[%s2089_s1 + $0x1c0] sm:$0xff]  ;;  %v331_v11 = vld [vmem:[%s2089_s1 + $0x1f8] sm:$0xff]  ;;  %v1176_v14 = vpack.c.bf16 %v402_v3, %v400_v2  ;;  %v409_v18 = vld [vmem:[%s2089_s1 + $0x468] sm:$0xff] }
  0x3c   : > { %1081 = vmatpush1.bf16.msra.mxu1 %v1080_v16  ;;  %v230_v12 = vld [vmem:[%s1627_s11 + $0x38] sm:$0xff]  ;;  %v404_v16 = vld [vmem:[%s2089_s1 + $0x440] sm:$0xff]  ;;  %v1102_v21 = vpack.c.bf16 %v331_v11, %v329_v10  ;;  %v330_v23 = vld [vmem:[%s2089_s1 + $0x1f0] sm:$0xff] }
  0x3d   : > { %1153 = vmatpush1.bf16.msra.mxu0 %v1152_v1  ;;  %1083 = vmatprep.subr.bf16.mxu1 %v1082_v19  ;;  %v1174_v1 = vpack.c.bf16 %v403_v57, %v401_v55  ;;  %v1100_v19 = vpack.c.bf16 %v326_v9, %v324_v8  ;;  %v411_v20 = vld [vmem:[%s2089_s1 + $0x478] sm:$0xff]  ;;  %v328_v22 = vld [vmem:[%s2089_s1 + $0x1e0] sm:$0xff]  ;;  %v241_v26 = vld [vmem:[%s1627_s11 + $0x90] sm:$0xff] }
  0x3e   : > { %1155 = vmatprep.subr.bf16.mxu0 %v1154_v5  ;;  %v1096_v5 = vpack.c.bf16 %v322_v59, %v320_v58  ;;  %v235_v24 = vld [vmem:[%s1627_s11 + $0x60] sm:$0xff]  ;;  %v1182_v27 = vpack.c.bf16 %v411_v20, %v409_v18  ;;  %v240_v33 = vld [vmem:[%s1627_s11 + $0x88] sm:$0xff]  ;;  %v246_v35 = vld [vmem:[%s1627_s11 + $0xb8] sm:$0xff]  ;;  %v1369_v59 = vmov 0.0  }
  0x3f   : > { %v408_v28 = vld [vmem:[%s2089_s1 + $0x460] sm:$0xff]  ;;  %v229_v39 = vld [vmem:[%s1627_s11 + $0x30] sm:$0xff]  ;;  %v234_v43 = vld [vmem:[%s1627_s11 + $0x58] sm:$0xff] }
  0x40   : > { %1085 = vmatpush1.bf16.msra.mxu1 %v1084_v29  ;;  %v410_v29 = vld [vmem:[%s2089_s1 + $0x470] sm:$0xff]  ;;  %v829_v31 = vld [vmem:[%s2091_s3] sm:$0xff]  ;;  %v256_v45 = vld [vmem:[%s1627_s11 + $0x108] sm:$0xff] }
  0x41   : > { %1157 = vmatpush1.bf16.msra.mxu0 %v1156_v13  ;;  %1087 = vmatprep.subr.bf16.mxu1 %v1086_v32  ;;  %v236_v13 = vld [vmem:[%s1627_s11 + $0x68] sm:$0xff]  ;;  %v1184_v34 = vpack.c.bf16 %v410_v29, %v408_v28  ;;  %v223_v36 = vld [vmem:[%s1627_s11] sm:$0xff]  ;;  %v245_v40 = vld [vmem:[%s1627_s11 + $0xb0] sm:$0xff] }
  0x42   : > { %1159 = vmatprep.subr.bf16.mxu0 %v1158_v17  ;;  %v406_v17 = vld [vmem:[%s2089_s1 + $0x450] sm:$0xff]  ;;  %v830_v32 = vld [vmem:[%s2091_s3 + $0x8] sm:$0xff]  ;;  %v239_v47 = vld [vmem:[%s1627_s11 + $0x80] sm:$0xff] }
  0x43   : > { %v233_v46 = vld [vmem:[%s1627_s11 + $0x50] sm:$0xff]  ;;  %v255_v48 = vld [vmem:[%s1627_s11 + $0x100] sm:$0xff]  ;;  %v266_v53 = vld [vmem:[%s1627_s11 + $0x158] sm:$0xff] }
  0x44   : > { %1089 = vmatpush1.bf16.msra.mxu1 %v1088_v41  ;;  %v251_v41 = vld [vmem:[%s1627_s11 + $0xe0] sm:$0xff]  ;;  %v261_v49 = vld [vmem:[%s1627_s11 + $0x130] sm:$0xff]  ;;  %v248_v57 = vld [vmem:[%s1627_s11 + $0xc8] sm:$0xff] }
  0x45   : > { %1161 = vmatpush1.bf16.msra.mxu0 %v1160_v25  ;;  %1091 = vmatprep.subr.bf16.mxu1 %v1090_v44  ;;  %v1180_v25 = vpack.c.bf16 %v406_v17, %v404_v16  ;;  %v250_v44 = vld [vmem:[%s1627_s11 + $0xd8] sm:$0xff]  ;;  %v243_v54 = vld [vmem:[%s1627_s11 + $0xa0] sm:$0xff]  ;;  %v249_v55 = vld [vmem:[%s1627_s11 + $0xd0] sm:$0xff] }
  0x46   : > { %1163 = vmatprep.subr.bf16.mxu0 %v1162_v30  ;;  %v1104_v30 = vpack.c.bf16 %v330_v23, %v328_v22  ;;  %v254_v58 = vld [vmem:[%s1627_s11 + $0xf8] sm:$0xff]  ;;  %v227_v60 = vld [vmem:[%s1627_s11 + $0x20] sm:$0xff]  ;;  %v253_v61 = vld [vmem:[%s1627_s11 + $0xf0] sm:$0xff] }
  0x47   : > { %v237_v2 = vld [vmem:[%s1627_s11 + $0x70] sm:$0xff]  ;;  %v263_v3 = vld [vmem:[%s1627_s11 + $0x140] sm:$0xff]  ;;  %v242_v4 = vld [vmem:[%s1627_s11 + $0x98] sm:$0xff] }
  0x48   : > { %1093 = vmatpush1.bf16.msra.mxu1 %v1092_v51  ;;  %v244_v51 = vld [vmem:[%s1627_s11 + $0xa8] sm:$0xff]  ;;  %v262_v8 = vld [vmem:[%s1627_s11 + $0x138] sm:$0xff]  ;;  %v267_v9 = vld [vmem:[%s1627_s11 + $0x160] sm:$0xff] }
  0x49   : > { %1165 = vmatpush1.bf16.msra.mxu0 %v1164_v38  ;;  %1095 = vmatprep.subr.bf16.mxu1 %v1094_v56  ;;  %v1187_v38 = vpack.c.bf16 %v830_v32, %v829_v31  ;;  %v265_v56 = vld [vmem:[%s1627_s11 + $0x150] sm:$0xff]  ;;  %v252_v6 = vld [vmem:[%s1627_s11 + $0xe8] sm:$0xff]  ;;  %v832_v11 = vld [vmem:[%s2091_s3 + $0x18] sm:$0xff] }
  0x4a   : > { %1167 = vmatprep.subr.bf16.mxu0 %v1166_v42  ;;  %v228_v42 = vld [vmem:[%s1627_s11 + $0x28] sm:$0xff]  ;;  %v831_v10 = vld [vmem:[%s2091_s3 + $0x10] sm:$0xff]  ;;  %v836_v17 = vld [vmem:[%s2091_s3 + $0x38] sm:$0xff] }
  0x4b   : > { %v835_v16 = vld [vmem:[%s2091_s3 + $0x30] sm:$0xff]  ;;  %v838_v20 = vld [vmem:[%s2091_s3 + $0x48] sm:$0xff]  ;;  %v840_v23 = vld [vmem:[%s2091_s3 + $0x58] sm:$0xff] }
  0x4c   : > { %1097 = vmatpush1.bf16.msra.mxu1 %v1096_v5  ;;  %v247_v5 = vld [vmem:[%s1627_s11 + $0xc0] sm:$0xff]  ;;  %v1196_v18 = vpack.c.bf16 %v836_v17, %v835_v16  ;;  %v839_v22 = vld [vmem:[%s2091_s3 + $0x50] sm:$0xff]  ;;  %v844_v29 = vld [vmem:[%s2091_s3 + $0x78] sm:$0xff] }
  0x4d   : > { %1169 = vmatpush1.bf16.msra.mxu0 %v1168_v50  ;;  %1099 = vmatprep.subr.bf16.mxu1 %v1098_v7  ;;  %v238_v50 = vld [vmem:[%s1627_s11 + $0x78] sm:$0xff]  ;;  %v257_v7 = vld [vmem:[%s1627_s11 + $0x110] sm:$0xff]  ;;  %v845_v31 = vld [vmem:[%s2091_s3 + $0x80] sm:$0xff] }
  0x4e   : > { %1171 = vmatprep.subr.bf16.mxu0 %v1170_v52  ;;  %v260_v52 = vld [vmem:[%s1627_s11 + $0x128] sm:$0xff]  ;;  %v843_v28 = vld [vmem:[%s2091_s3 + $0x70] sm:$0xff] }
  0x4f   : > { %v846_v32 = vld [vmem:[%s2091_s3 + $0x88] sm:$0xff] }
  0x50   : > { %624 = vmatmul.mubr.f32.vlgmr.msra.gmra.mrb[0].mxu0 %v225_v62  ;;  %1101 = vmatpush1.bf16.msra.mxu1 %v1100_v19  ;;  %v259_v62 = vld [vmem:[%s1627_s11 + $0x120] sm:$0xff] }
  0x51   : > { %1173 = vmatpush1.bf16.msra.mxu0 %v1172_v63  ;;  %629 = vmatprep.mubr.f32.mxu0 %v231_v0  ;;  %v232_v63 = vld [vmem:[%s1627_s11 + $0x48] sm:$0xff]  ;;  %v258_v0 = vld [vmem:[%s1627_s11 + $0x118] sm:$0xff]  ;;  %v837_v19 = vld [vmem:[%s2091_s3 + $0x40] sm:$0xff] }
  0x52   : > { %1175 = vmatprep.subr.bf16.mxu0 %v1174_v1  ;;  %1103 = vmatprep.subr.bf16.mxu1 %v1102_v21  ;;  %v264_v1 = vld [vmem:[%s1627_s11 + $0x148] sm:$0xff]  ;;  %v1199_v21 = vpack.c.bf16 %v838_v20, %v837_v19  ;;  %s2045_s11 = scalar_lea.hbm %s2093_s5, %s1039_s17 }
  0x54   : > { %630 = vmatmul.mubr.f32.gmra.mrb[2].mxu0 %v230_v12  ;;  %1105 = vmatpush1.bf16.msra.mxu1 %v1104_v30  ;;  %v1190_v12 = vpack.c.bf16 %v832_v11, %v831_v10  ;;  %v1208_v30 = vpack.c.bf16 %v844_v29, %v843_v28  ;;  %v815_v28 = vlaneseq }
  0x55   : > { %635 = vmatprep.mubr.f32.mxu0 %v236_v13  ;;  %1177 = vmatpush1.bf16.msra.mxu0 %v1176_v14  ;;  %v833_v13 = vld [vmem:[%s2091_s3 + $0x20] sm:$0xff]  ;;  %v834_v14 = vld [vmem:[%s2091_s3 + $0x28] sm:$0xff] }
  0x56   : > { %1179 = vmatprep.subr.bf16.mxu0 %v1178_v15  ;;  %1186 = vmatprep.subr.bf16.mxu1 %v1368_v37  ;;  %v1193_v15 = vpack.c.bf16 %v834_v14, %v833_v13 }
  0x57   : > { %505 = vmatmul.mubr.f32.vlgmr.msra.gmra.mrb[0].mxu1 %v223_v36 }
  0x58   : > { %636 = vmatmul.mubr.f32.gmra.mrb[4].mxu0 %v235_v24  ;;  %510 = vmatprep.mubr.f32.mxu1 %v229_v39  ;;  %v1202_v24 = vpack.c.bf16 %v840_v23, %v839_v22  ;;  %v850_v39 = vld [vmem:[%s2091_s3 + $0xa8] sm:$0xff] }
  0x59   : > { %641 = vmatprep.mubr.f32.mxu0 %v241_v26  ;;  %1181 = vmatpush1.bf16.msra.mxu0 %v1180_v25  ;;  %v841_v25 = vld [vmem:[%s2091_s3 + $0x60] sm:$0xff]  ;;  %v842_v26 = vld [vmem:[%s2091_s3 + $0x68] sm:$0xff] }
  0x5a   : > { %1183 = vmatprep.subr.bf16.mxu0 %v1182_v27  ;;  %1188 = vmatpush1.bf16.msra.mxu1 %v1187_v38  ;;  %v1205_v27 = vpack.c.bf16 %v842_v26, %v841_v25  ;;  %v849_v38 = vld [vmem:[%s2091_s3 + $0xa0] sm:$0xff] }
  0x5b   : > { %1189 = vmatprep.subr.bf16.mxu1 %v1368_v37  ;;  %511 = vmatmul.mubr.f32.gmra.mrb[2].mxu1 %v228_v42  ;;  %v852_v42 = vld [vmem:[%s2091_s3 + $0xb8] sm:$0xff] }
  0x5c   : > { %642 = vmatmul.mubr.f32.gmra.mrb[6].mxu0 %v240_v33  ;;  %516 = vmatprep.mubr.f32.mxu1 %v234_v43  ;;  %v1211_v33 = vpack.c.bf16 %v846_v32, %v845_v31 }
  0x5d   : > { %647 = vmatprep.mubr.f32.mxu0 %v246_v35  ;;  %1185 = vmatpush1.bf16.msra.mxu0 %v1184_v34  ;;  %v847_v34 = vld [vmem:[%s2091_s3 + $0x90] sm:$0xff]  ;;  %v848_v35 = vld [vmem:[%s2091_s3 + $0x98] sm:$0xff] }
  0x5e   : > { %1191 = vmatpush1.bf16.msra.mxu1 %v1190_v12  ;;  %v1214_v36 = vpack.c.bf16 %v848_v35, %v847_v34  ;;  %v816_v35 = vshrl.u32 %v815_v28, 7 }
  0x5f   : > { %517 = vmatmul.mubr.f32.gmra.mrb[4].mxu1 %v233_v46  ;;  %1192 = vmatprep.subr.bf16.mxu1 %v1368_v37 }
  0x60   : > { %648 = vmatmul.mubr.f32.gmra.mrb[8].mxu0 %v245_v40  ;;  %522 = vmatprep.mubr.f32.mxu1 %v239_v47  ;;  %v1217_v40 = vpack.c.bf16 %v850_v39, %v849_v38 }
  0x61   : > { %653 = vmatprep.mubr.f32.mxu0 %v251_v41  ;;  %v851_v41 = vld [vmem:[%s2091_s3 + $0xb0] sm:$0xff] }
  0x62   : > { %1194 = vmatpush1.bf16.msra.mxu1 %v1193_v15  ;;  %v1220_v43 = vpack.c.bf16 %v852_v42, %v851_v41 }
  0x63   : > { %523 = vmatmul.mubr.f32.gmra.mrb[6].mxu1 %v238_v50  ;;  %1195 = vmatprep.subr.bf16.mxu1 %v1368_v37 }
  0x64   : > { %654 = vmatmul.mubr.f32.gmra.mrb[10].mxu0 %v250_v44  ;;  %528 = vmatprep.mubr.f32.mxu1 %v244_v51 }
  0x65   : > { %659 = vmatprep.mubr.f32.mxu0 %v256_v45 }
  0x66   : > { %1197 = vmatpush1.bf16.msra.mxu1 %v1196_v18 }
  0x67   : > { %529 = vmatmul.mubr.f32.gmra.mrb[8].mxu1 %v243_v54  ;;  %1198 = vmatprep.subr.bf16.mxu1 %v1368_v37 }
  0x68   : > { %660 = vmatmul.mubr.f32.gmra.mrb[12].mxu0 %v255_v48  ;;  %534 = vmatprep.mubr.f32.mxu1 %v249_v55 }
  0x69   : > { %665 = vmatprep.mubr.f32.mxu0 %v261_v49 }
  0x6a   : > { %1200 = vmatpush1.bf16.msra.mxu1 %v1199_v21 }
  0x6b   : > { %535 = vmatmul.mubr.f32.gmra.mrb[10].mxu1 %v248_v57  ;;  %1201 = vmatprep.subr.bf16.mxu1 %v1368_v37 }
  0x6c   : > { %666 = vmatmul.mubr.f32.gmra.mrb[14].mxu0 %v260_v52  ;;  %540 = vmatprep.mubr.f32.mxu1 %v254_v58 }
  0x6d   : > { %671 = vmatprep.mubr.f32.mxu0 %v266_v53 }
  0x6e   : > { %1203 = vmatpush1.bf16.msra.mxu1 %v1202_v24 }
  0x6f   : > { %541 = vmatmul.mubr.f32.gmra.mrb[12].mxu1 %v253_v61  ;;  %1204 = vmatprep.subr.bf16.mxu1 %v1368_v37 }
  0x70   : > { %672 = vmatmul.mubr.f32.gmra.mrb[16].mxu0 %v265_v56  ;;  %546 = vmatprep.mubr.f32.mxu1 %v259_v62 }
  0x71   : > { %742 = vmatprep.mubr.f32.mxu0 %v1369_v59 }
  0x72   : > { %1206 = vmatpush1.bf16.msra.mxu1 %v1205_v27 }
  0x73   : > { %547 = vmatmul.mubr.f32.gmra.mrb[14].mxu1 %v258_v0  ;;  %1207 = vmatprep.subr.bf16.mxu1 %v1368_v37 }
  0x74   : > { %1027 = vmatmul.mubr.msk.f32.vlgmr.msra.gmra.mrb[0].mxu0 %vm412_vm0, %v227_v60  ;;  %552 = vmatprep.mubr.f32.mxu1 %v264_v1 }
  0x75   : > { %748 = vmatprep.mubr.f32.mxu0 %v1369_v59 }
  0x76   : > { %1209 = vmatpush1.bf16.msra.mxu1 %v1208_v30 }
  0x77   : > { %553 = vmatmul.mubr.f32.gmra.mrb[16].mxu1 %v263_v3  ;;  %1210 = vmatprep.subr.bf16.mxu1 %v1368_v37 }
  0x78   : > { %1028 = vmatmul.mubr.msk.f32.gmra.mrb[2].mxu0 %vm412_vm0, %v232_v63 }
  0x79   : > { %754 = vmatprep.mubr.f32.mxu0 %v1369_v59 }
  0x7a   : > { %1212 = vmatpush1.bf16.msra.mxu1 %v1211_v33 }
  0x7b   : > { %1213 = vmatprep.subr.bf16.mxu1 %v1368_v37 }
  0x7c   : > { %1029 = vmatmul.mubr.msk.f32.gmra.mrb[4].mxu0 %vm412_vm0, %v237_v2 }
  0x7d   : > { %760 = vmatprep.mubr.f32.mxu0 %v1369_v59 }
  0x7e   : > { %1215 = vmatpush1.bf16.msra.mxu1 %v1214_v36 }
  0x7f   : > { %1216 = vmatprep.subr.bf16.mxu1 %v1368_v37 }
  0x80   : > { %1030 = vmatmul.mubr.msk.f32.gmra.mrb[6].mxu0 %vm412_vm0, %v242_v4 }
  0x81   : > { %766 = vmatprep.mubr.f32.mxu0 %v1369_v59 }
  0x82   : > { %1218 = vmatpush1.bf16.msra.mxu1 %v1217_v40 }
  0x83   : > { %1219 = vmatprep.subr.bf16.mxu1 %v1368_v37 }
  0x84   : > { %1031 = vmatmul.mubr.msk.f32.gmra.mrb[8].mxu0 %vm412_vm0, %v247_v5 }
  0x85   : > { %772 = vmatprep.mubr.f32.mxu0 %v1369_v59 }
  0x86   : > { %1221 = vmatpush1.bf16.msra.mxu1 %v1220_v43  ;;  %v817_v43 = vsub.s32 0, %v816_v35 }
  0x88   : > { %1032 = vmatmul.mubr.msk.f32.gmra.mrb[10].mxu0 %vm412_vm0, %v252_v6 }
  0x89   : > { %778 = vmatprep.mubr.f32.mxu0 %v1369_v59 }
  0x8c   : > { %1033 = vmatmul.mubr.msk.f32.gmra.mrb[12].mxu0 %vm412_vm0, %v257_v7 }
  0x8d   : > { %784 = vmatprep.mubr.f32.mxu0 %v1369_v59 }
  0x90   : > { %1034 = vmatmul.mubr.msk.f32.gmra.mrb[14].mxu0 %vm412_vm0, %v262_v8 }
  0x91   : > { %790 = vmatprep.mubr.f32.mxu0 %v1369_v59 }
  0x94   : > { %1035 = vmatmul.mubr.msk.f32.gmra.mrb[16].mxu0 %vm412_vm0, %v267_v9 }
 0x12a   : > { %v506_v44 = vpop.f32.mrb[0].mxu1 }
 0x12b   : > { %v508_v45 = vpop.f32.mrb[1].mxu1 }
 0x12e   : > { %v512_v46 = vpop.f32.mrb[2].mxu1 }
 0x12f   : > { %v514_v47 = vpop.f32.mrb[3].mxu1 }
 0x132   : > { %v518_v48 = vpop.f32.mrb[4].mxu1 }
 0x133   : > { %v520_v49 = vpop.f32.mrb[5].mxu1 }
 0x136   : > { %v524_v50 = vpop.f32.mrb[6].mxu1 }
 0x137   : > { %v526_v51 = vpop.f32.mrb[7].mxu1 }
 0x13a   : > { %v530_v52 = vpop.f32.mrb[8].mxu1 }
 0x13b   : > { %v532_v37 = vpop.f32.mrb[9].mxu1 }
 0x13e   : > { %v536_v53 = vpop.f32.mrb[10].mxu1 }
 0x13f   : > { %v538_v54 = vpop.f32.mrb[11].mxu1 }
 0x142   : > { %v542_v59 = vpop.f32.mrb[12].mxu1 }
 0x143   : > { %v544_v60 = vpop.f32.mrb[13].mxu1 }
 0x146   : > { %v548_v1 = vpop.f32.mrb[14].mxu1 }
 0x147   : > { %v744_v55 = vpop.f32.mrb[0].mxu0  ;;  %v550_v3 = vpop.f32.mrb[15].mxu1 }
 0x148   : > { %v1222_v56 = vadd.f32 %v744_v55, %v506_v44  ;;  %v746_v57 = vpop.f32.mrb[1].mxu0 }
 0x149   : > { %v1223_v58 = vadd.f32 %v746_v57, %v508_v45  ;;  %v813_v45 = vld [vmem:[%s2090_s2] sm:$0x3] }
 0x14a   : > { %v554_v9 = vpop.f32.mrb[16].mxu1 }
 0x14b   : > { %v750_v61 = vpop.f32.mrb[2].mxu0  ;;  %v556_v11 = vpop.f32.mrb[17].mxu1 }
 0x14c   : > { %v1224_v62 = vadd.f32 %v750_v61, %v512_v46  ;;  %v752_v63 = vpop.f32.mrb[3].mxu0  ;;  %v821_v46 = vsub.s32 1, %v816_v35 }
 0x14d   : > { %v1225_v0 = vadd.f32 %v752_v63, %v514_v47 }
 0x14e   : > { %v797_v2 = vmax.f32 %v1222_v56, %v1224_v62 }
 0x14f   : > { %v798_v4 = vmax.f32 %v1223_v58, %v1225_v0  ;;  %v756_v5 = vpop.f32.mrb[4].mxu0 }
 0x150   : > { %v1226_v6 = vadd.f32 %v756_v5, %v518_v48  ;;  %v758_v7 = vpop.f32.mrb[5].mxu0 }
 0x151   : > { %v1227_v8 = vadd.f32 %v758_v7, %v520_v49 }
 0x152   : > { %v799_v10 = vmax.f32 %v797_v2, %v1226_v6 }
 0x153   : > { %v800_v12 = vmax.f32 %v798_v4, %v1227_v8  ;;  %v762_v13 = vpop.f32.mrb[6].mxu0 }
 0x154   : > { %v1228_v14 = vadd.f32 %v762_v13, %v524_v50  ;;  %v764_v15 = vpop.f32.mrb[7].mxu0 }
 0x155   : > { %v1229_v16 = vadd.f32 %v764_v15, %v526_v51  ;;  %v818_v51 = vrot.slane %v813_v45, %v817_v43 }
 0x156   : > { %v801_v17 = vmax.f32 %v799_v10, %v1228_v14 }
 0x157   : > { %v802_v18 = vmax.f32 %v800_v12, %v1229_v16  ;;  %v768_v19 = vpop.f32.mrb[8].mxu0 }
 0x158   : > { %v1230_v20 = vadd.f32 %v768_v19, %v530_v52  ;;  %v770_v21 = vpop.f32.mrb[9].mxu0 }
 0x159   : > { %v1231_v22 = vadd.f32 %v770_v21, %v532_v37 }
 0x15a   : > { %v803_v23 = vmax.f32 %v801_v17, %v1230_v20 }
 0x15b   : > { %v804_v24 = vmax.f32 %v802_v18, %v1231_v22  ;;  %v774_v25 = vpop.f32.mrb[10].mxu0 }
 0x15c   : > { %v1232_v26 = vadd.f32 %v774_v25, %v536_v53  ;;  %v776_v27 = vpop.f32.mrb[11].mxu0  ;;  %v822_v53 = vrot.slane %v813_v45, %v821_v46 }
 0x15d   : > { %v1233_v29 = vadd.f32 %v776_v27, %v538_v54 }
 0x15e   : > { %v805_v30 = vmax.f32 %v803_v23, %v1232_v26 }
 0x15f   : > { %v806_v31 = vmax.f32 %v804_v24, %v1233_v29  ;;  %v780_v32 = vpop.f32.mrb[12].mxu0 }
 0x160   : > { %v1234_v33 = vadd.f32 %v780_v32, %v542_v59  ;;  %v782_v34 = vpop.f32.mrb[13].mxu0 }
 0x161   : > { %v1235_v36 = vadd.f32 %v782_v34, %v544_v60  ;;  %v1036_v60 = vld [vmem:[%s2092_s4] ss:$0 sm:$0xff] }
 0x162   : > { %v807_v38 = vmax.f32 %v805_v30, %v1234_v33 }
 0x163   : > { %v808_v39 = vmax.f32 %v806_v31, %v1235_v36  ;;  %v786_v40 = vpop.f32.mrb[14].mxu0 }
 0x164   : > { %v1236_v41 = vadd.f32 %v786_v40, %v548_v1  ;;  %v788_v42 = vpop.f32.mrb[15].mxu0 }
 0x165   : > { %v1237_v44 = vadd.f32 %v788_v42, %v550_v3 }
 0x166   : > { %v809_v47 = vmax.f32 %v807_v38, %v1236_v41 }
 0x167   : > { %v810_v48 = vmax.f32 %v808_v39, %v1237_v44  ;;  %v792_v49 = vpop.f32.mrb[16].mxu0 }
 0x168   : > { %v1238_v50 = vadd.f32 %v792_v49, %v554_v9  ;;  %v794_v52 = vpop.f32.mrb[17].mxu0 }
 0x169   : > { %v1239_v37 = vadd.f32 %v794_v52, %v556_v11 }
 0x16a   : > { %v811_v54 = vmax.f32 %v809_v47, %v1238_v50 }
 0x16b   : > { %v812_v55 = vmax.f32 %v810_v48, %v1239_v37 }
 0x16c   : > { %v825_v56 = vadd.f32 %v818_v51, %v811_v54 }
 0x16d   : > { %v826_v57 = vadd.f32 %v822_v53, %v812_v55 }
 0x16e   : > { %v827_v59 = vmax.f32 %v825_v56, 0.0 }
 0x16f   : > { %v828_v58 = vmax.f32 %v826_v57, 0.0 }
 0x171   : > { %1037 = vmatprep.mubr.msk.f32.mxu1 %vm412_vm0, %v828_v58 }
 0x172   : > { %928 = vmatmul.mubr.f32.vlgmr.msra.gmra.mrb[18].mxu1 %v827_v59 }
 0x245   : > { %v929_v61 = vpop.f32.mrb[18].mxu1 }
 0x246   : > { %v930_v62 = vadd.f32 %v1036_v60, %v929_v61  ;;  %v931_v63 = vpop.f32.mrb[19].mxu1 }
 0x248   : > { %v934_v0 = vsel %vm933_vm1, %v930_v62, -inf }
 0x249   : > { %935 = vmax.xlane.f32.xlu0 %v934_v0 }
 0x2d6   : > { %v936_v1 = vpop.xlane.xlu0 %935 }
 0x2d7   : > { %v937_v2 = vsub.f32 %v930_v62, %v936_v1 }
 0x2d9   : > { %v938_v3 = vmul.f32 1.442695, %v937_v2 }
 0x2db   : > { %1300 = vpow2.f32 %v938_v3 }
 0x2e5   : > { %v1301_v4 = vpop.eup %1300 }
 0x2e6   : > { %v940_v5 = vsel %vm933_vm1, %v1301_v4, 0.0 }
 0x2e7   : > { %941 = vadd.xlane.f32.xlu0 %v940_v5 }
 0x374   : > { %v942_v6 = vpop.xlane.xlu0 %941 }
 0x375   : > { %1302 = vlog2.f32 %v942_v6 }
 0x37f   : > { %v1303_v7 = vpop.eup %1302 }
 0x380   : > { %v944_v8 = vmul.f32 0.6931472, %v1303_v7 }
 0x382   : > { %v945_v9 = vadd.f32 %v944_v8, %v936_v1 }
 0x384   : > { %v946_v10 = vsub.f32 %v930_v62, %v945_v9 }
 0x386   : > { %947 = vst.msk [vmem:[%s217_s14] sm:$0xff] %vm933_vm1, %v946_v10 }
 0x387   : > { %1317 = shalt.err (!%p1314_p3)
}
 0x388   : > { %s1318_s6 = scalar_lea.hbm %s2045_s11, 128  ;;  %s1322_s10 = scalar_lea.hbm %s2093_s5, 256 }
 0x389   : > { %p1319_p4 = scmp.ne.s32.totalorder %s2045_s11, %s1318_s6  ;;  %p1323_p9 = scmp.lt.u32.totalorder %s2045_s11, %s2093_s5 }
 0x38a   : > { %p1324_p10 = scmp.lt.u32.totalorder %s1322_s10, %s1318_s6  ;;  %p1326_p12 = scmp.lt.u32.totalorder %s1318_s6, %s2045_s11 }
 0x38b   : > { %p1320_p7 = pnand %p1319_p4, %p1439_p5 }
 0x38c   : > { %p1325_p11 = por %p1324_p10, %p1323_p9 }
 0x38d   : > { %p1321_p8 = pneg %p1320_p7 }
 0x38e   : > { %p1327_p13 = por %p1326_p12, %p1325_p11 }
 0x390   : > { %p1328_p0 = pnand %p1327_p13, %p1321_p8 }
 0x392   : > { %1331 = shalt.err (!%p1328_p0)
}
 0x393   : > { %1259 = dma.vmem_to_hbm [thread:$0]  (%p1439_p5), %s2047_s15, 128, %s2045_s11, %s949_s23  }
 0x394 PF: > { %p1265_p1 = scmp.ge.s32.totalorder %s1366_s21, 2  ;;  %s974_s17 = sand.u32 1, %s1354_s18  }
 0x395   : > { %s975_s14 = scalar_lea.sflag [#allocation3], %s974_s17 }
 0x396   : > { %p1262_p2 = pnand %p1265_p1, %p1443_p6 }
 0x398   : > { %1349 = dma.done.wait (!%p1262_p2), %s975_s14, 128  }
 0x399   : > { %1351 = vsyncadd (!%p1262_p2), %s975_s14, 4294967168  ;;  %p15_p3 = scmp.ge.s32.totalorder %s1426_s24, 4   ;;  %s2096_s18 = smov %s1358_s19 }
 0x39a   : > { %s2097_s19 = smov %s1362_s20  ;;  %s2098_s20 = smov %s1437_s27 }
 0x39b   : > { %s2099_s21 = smov %s1426_s24  ;;  %17 = sbr.rel (!%p15_p3) target bundleno = 3 (0x3), region = 75 }
 0x3a2   :  { %980 = vsyncpa [#allocation3], 1 }
 0x3a3   :  { %982 = vsyncpa [#allocation3 + $0x1], 1 }

</bundles_post_ra>
